<compile_context>
chip_gen: v6e
topology: v6e:2x2x1
jax: 0.10.0
libtpu: 0.0.40
codegen_flags: <defaults>
</compile_context>

<pallas_src>
import jax
import jax.numpy as jnp
from jax.experimental import pallas as pl
from jax.experimental.pallas import tpu as pltpu


def round_up(x, m):
    return (x + m - 1) // m * m


def lstm_cell_kernel(xh_ref, c_ref, w_ref, b_ref, h_out_ref, c_out_ref):
    # Single fused MXU matmul over K = I + H (bf16 inputs, f32 accumulation),
    # bias (f32, with forget-gate +1.0 and sigmoid 0.5-prescale already folded).
    z = jnp.dot(xh_ref[...], w_ref[...],
                preferred_element_type=jnp.float32) + b_ref[...]

    Hp = h_out_ref.shape[-1]          # multiple of 128 -> lane-aligned slices
    half = jnp.float32(0.5)

    # sigmoid(v) = 0.5*tanh(0.5*v) + 0.5 ; the 0.5*v scale is folded into the
    # weights/bias of the three sigmoid gates, so each gate is ONE tanh (EUP).
    input_activation = jnp.tanh(z[:, 0 * Hp:1 * Hp])
    input_gate = half * jnp.tanh(z[:, 1 * Hp:2 * Hp]) + half
    forget_gate = half * jnp.tanh(z[:, 2 * Hp:3 * Hp]) + half  # +1.0 folded
    output_gate = half * jnp.tanh(z[:, 3 * Hp:4 * Hp]) + half

    c = c_ref[...]
    new_c = c * forget_gate + input_activation * input_gate
    new_h = jnp.tanh(new_c) * output_gate

    h_out_ref[...] = new_h            # f32, lane-dense (Hp % 128 == 0)
    c_out_ref[...] = new_c


def prepare_params(w_in, b_in, w_rec, *, compute_dtype=jnp.bfloat16):
    """One-time weight preparation: fuse, fold, pad, cast.

    w_in: (I, 4H), b_in: (1, 4H), w_rec: (H, 4H)  (transposed vs PyTorch).
    Returns (w_pad, b_pad) with shapes (K_pad, 4*H_pad) and (1, 4*H_pad).
    """
    I = w_in.shape[0]
    H = w_rec.shape[0]
    K = I + H
    H_pad = round_up(H, 128)
    K_pad = round_up(K, 8)

    w_cat = jnp.concatenate([w_in, w_rec], axis=0).astype(jnp.float32)  # (K, 4H)
    b = b_in.reshape(1, 4 * H).astype(jnp.float32)

    # Fold the 0.5 pre-scale of the three sigmoid gates (gate 0 = tanh gate).
    gate_scale = jnp.concatenate(
        [jnp.ones((1, H), jnp.float32), jnp.full((1, 3 * H), 0.5, jnp.float32)],
        axis=1)
    w_cat = w_cat * gate_scale
    b = b * gate_scale
    # Fold the '+1.0' forget-gate bias (becomes +0.5 after the 0.5 pre-scale).
    b = b.at[:, 2 * H:3 * H].add(0.5)

    # Pad each gate block to H_pad (lane-dense) and K to a sublane multiple.
    w4 = jnp.pad(w_cat.reshape(K, 4, H),
                 ((0, K_pad - K), (0, 0), (0, H_pad - H)))
    b4 = jnp.pad(b.reshape(1, 4, H), ((0, 0), (0, 0), (0, H_pad - H)))
    w_pad = w4.reshape(K_pad, 4 * H_pad).astype(compute_dtype)
    b_pad = b4.reshape(1, 4 * H_pad)                       # keep bias f32
    return w_pad, b_pad


def lstm_cell(x, h, c, w_pad, b_pad, *, hidden_size):
    """x: (B, I), h/c: (B, H); w_pad/b_pad from prepare_params."""
    B, I = x.shape
    H = hidden_size
    K = I + H
    K_pad = w_pad.shape[0]
    H_pad = w_pad.shape[1] // 4

    bm = min(round_up(B, 8), 128)         # batch tile (sublane multiple)
    B_pad = round_up(B, bm)
    grid = (B_pad // bm,)

    # Fused activation [x | h], padded & cast to the matmul dtype.
    xh = jnp.concatenate([x, h], axis=1)
    xh = jnp.pad(xh, ((0, B_pad - B), (0, K_pad - K))).astype(w_pad.dtype)
    c_p = jnp.pad(c, ((0, B_pad - B), (0, H_pad - H))).astype(jnp.float32)

    out_shape = (jax.ShapeDtypeStruct((B_pad, H_pad), jnp.float32),
                 jax.ShapeDtypeStruct((B_pad, H_pad), jnp.float32))

    h_out, c_out = pl.pallas_call(
        lstm_cell_kernel,
        out_shape=out_shape,
        grid=grid,
        in_specs=[
            pl.BlockSpec((bm, K_pad), lambda i: (i, 0)),           # [x|h] tile
            pl.BlockSpec((bm, H_pad), lambda i: (i, 0)),           # c tile
            pl.BlockSpec((K_pad, 4 * H_pad), lambda i: (0, 0)),    # fused W (resident)
            pl.BlockSpec((1, 4 * H_pad), lambda i: (0, 0)),        # folded bias (resident)
        ],
        out_specs=(pl.BlockSpec((bm, H_pad), lambda i: (i, 0)),
                   pl.BlockSpec((bm, H_pad), lambda i: (i, 0))),
        compiler_params=pltpu.CompilerParams(
            dimension_semantics=("parallel",),
            vmem_limit_bytes=64 * 1024 * 1024),
    )(xh, c_p, w_pad, b_pad)

    return h_out[:B, :H], c_out[:B, :H]


def init_params(key, input_size, hidden_size):
    """Deterministic parameter init mirroring the PyTorch init_weights()."""
    k1, k2, k3 = jax.random.split(key, 3)
    out_features = 4 * hidden_size

    # input_map weight: xavier_uniform on the (4H, I) matrix, stored transposed.
    bound = jnp.sqrt(6.0 / (input_size + out_features))
    w_in_t = jax.random.uniform(k1, (out_features, input_size),
                                minval=-bound, maxval=bound, dtype=jnp.float32)
    w_in = w_in_t.T  # (I, 4H)

    # input_map bias: uniform(-0.1, 0.1)
    b_in = jax.random.uniform(k2, (1, out_features),
                              minval=-0.1, maxval=0.1, dtype=jnp.float32)

    # recurrent_map weight: orthogonal on (4H, H), stored transposed, no bias.
    w_rec_t = jax.nn.initializers.orthogonal()(k3, (out_features, hidden_size),
                                               jnp.float32)
    w_rec = w_rec_t.T  # (H, 4H)
    return w_in, b_in, w_rec


def reference(x, h, c, w_in, b_in, w_rec):
    z = x @ w_in + b_in + h @ w_rec
    H = h.shape[-1]
    i, ig, fg, og = (z[:, k * H:(k + 1) * H] for k in range(4))
    new_c = c * jax.nn.sigmoid(fg + 1.0) + jnp.tanh(i) * jax.nn.sigmoid(ig)
    new_h = jnp.tanh(new_c) * jax.nn.sigmoid(og)
    return new_h, new_c


if __name__ == "__main__":
    input_size = 32
    hidden_size = 32
    batch = 8

    key = jax.random.PRNGKey(0)
    kx, kh, kc, kp = jax.random.split(key, 4)

    x = jax.random.normal(kx, (batch, input_size), dtype=jnp.float32)
    h0 = jax.random.normal(kh, (batch, hidden_size), dtype=jnp.float32)
    c0 = jax.random.normal(kc, (batch, hidden_size), dtype=jnp.float32)
    w_in, b_in, w_rec = init_params(kp, input_size, hidden_size)

    # One-time fuse/fold/pad/cast of the parameters.
    w_pad, b_pad = prepare_params(w_in, b_in, w_rec)

    new_h, new_c = lstm_cell(x, h0, c0, w_pad, b_pad, hidden_size=hidden_size)
    jax.block_until_ready((new_h, new_c))

    ref_h, ref_c = reference(x, h0, c0, w_in, b_in, w_rec)
    # bf16 matmul inputs with f32 accumulation -> loosen tolerance vs pure f32.
    assert jnp.allclose(new_h, ref_h, atol=3e-2, rtol=3e-2)
    assert jnp.allclose(new_c, ref_c, atol=3e-2, rtol=3e-2)

    print("KERNEL_OK")
</pallas_src>

<mosaic_0001>
module attributes {stable_mosaic.version = 11 : i64} {
  func.func @lstm_cell_kernel(%arg0: i32, %arg1: memref<8x64xbf16, #tpu.memory_space<vmem>>, %arg2: memref<8x128xf32, #tpu.memory_space<vmem>>, %arg3: memref<64x512xbf16, #tpu.memory_space<vmem>>, %arg4: memref<1x512xf32, #tpu.memory_space<vmem>>, %arg5: memref<8x128xf32, #tpu.memory_space<vmem>>, %arg6: memref<8x128xf32, #tpu.memory_space<vmem>>) attributes {dimension_semantics = [#tpu.dimension_semantics<parallel>], iteration_bounds = array<i64: 1>, scalar_prefetch = 0 : i64, scratch_operands = 0 : i64, tpu.core_type = #tpu.core_type<tc>, window_params = [{transform_indices = @transform_0, window_bounds = array<i64: 8, 64>}, {transform_indices = @transform_1, window_bounds = array<i64: 8, 128>}, {pipeline_mode = #tpu.pipeline_mode<synchronous>, transform_indices = @transform_2, window_bounds = array<i64: 64, 512>}, {pipeline_mode = #tpu.pipeline_mode<synchronous>, transform_indices = @transform_3, window_bounds = array<i64: 1, 512>}, {transform_indices = @transform_4, window_bounds = array<i64: 8, 128>}, {transform_indices = @transform_5, window_bounds = array<i64: 8, 128>}]} {
    %c0 = arith.constant 0 : index
    %c0_0 = arith.constant 0 : index
    %0 = vector.load %arg1[%c0, %c0_0] : memref<8x64xbf16, #tpu.memory_space<vmem>>, vector<8x64xbf16>
    %c0_1 = arith.constant 0 : index
    %c0_2 = arith.constant 0 : index
    %1 = vector.load %arg3[%c0_1, %c0_2] : memref<64x512xbf16, #tpu.memory_space<vmem>>, vector<64x512xbf16>
    %cst = arith.constant dense<0.000000e+00> : vector<8x512xf32>
    %2 = tpu.matmul %0, %1, %cst {dimension_numbers = #tpu.dot_dimension_numbers<[1], [0], [0], [1], [0, 0, 1, 1], [], []>} : vector<8x64xbf16>, vector<64x512xbf16>, vector<8x512xf32> -> vector<8x512xf32>
    %c0_3 = arith.constant 0 : index
    %c0_4 = arith.constant 0 : index
    %3 = vector.load %arg4[%c0_3, %c0_4] : memref<1x512xf32, #tpu.memory_space<vmem>>, vector<1x512xf32>
    %4 = vector.broadcast %3 : vector<1x512xf32> to vector<8x512xf32>
    %5 = arith.addf %2, %4 : vector<8x512xf32>
    %6 = vector.extract_strided_slice %5 {offsets = [0, 0], sizes = [8, 128], strides = [1, 1]} : vector<8x512xf32> to vector<8x128xf32>
    %7 = math.tanh %6 : vector<8x128xf32>
    %8 = vector.extract_strided_slice %5 {offsets = [0, 128], sizes = [8, 128], strides = [1, 1]} : vector<8x512xf32> to vector<8x128xf32>
    %9 = math.tanh %8 : vector<8x128xf32>
    %cst_5 = arith.constant 5.000000e-01 : f32
    %10 = vector.broadcast %cst_5 : f32 to vector<8x128xf32>
    %11 = arith.mulf %10, %9 : vector<8x128xf32>
    %cst_6 = arith.constant 5.000000e-01 : f32
    %12 = vector.broadcast %cst_6 : f32 to vector<8x128xf32>
    %13 = arith.addf %11, %12 : vector<8x128xf32>
    %14 = vector.extract_strided_slice %5 {offsets = [0, 256], sizes = [8, 128], strides = [1, 1]} : vector<8x512xf32> to vector<8x128xf32>
    %15 = math.tanh %14 : vector<8x128xf32>
    %cst_7 = arith.constant 5.000000e-01 : f32
    %16 = vector.broadcast %cst_7 : f32 to vector<8x128xf32>
    %17 = arith.mulf %16, %15 : vector<8x128xf32>
    %cst_8 = arith.constant 5.000000e-01 : f32
    %18 = vector.broadcast %cst_8 : f32 to vector<8x128xf32>
    %19 = arith.addf %17, %18 : vector<8x128xf32>
    %20 = vector.extract_strided_slice %5 {offsets = [0, 384], sizes = [8, 128], strides = [1, 1]} : vector<8x512xf32> to vector<8x128xf32>
    %21 = math.tanh %20 : vector<8x128xf32>
    %cst_9 = arith.constant 5.000000e-01 : f32
    %22 = vector.broadcast %cst_9 : f32 to vector<8x128xf32>
    %23 = arith.mulf %22, %21 : vector<8x128xf32>
    %cst_10 = arith.constant 5.000000e-01 : f32
    %24 = vector.broadcast %cst_10 : f32 to vector<8x128xf32>
    %25 = arith.addf %23, %24 : vector<8x128xf32>
    %c0_11 = arith.constant 0 : index
    %c0_12 = arith.constant 0 : index
    %26 = vector.load %arg2[%c0_11, %c0_12] : memref<8x128xf32, #tpu.memory_space<vmem>>, vector<8x128xf32>
    %27 = arith.mulf %26, %19 : vector<8x128xf32>
    %28 = arith.mulf %7, %13 : vector<8x128xf32>
    %29 = arith.addf %27, %28 : vector<8x128xf32>
    %30 = math.tanh %29 : vector<8x128xf32>
    %31 = arith.mulf %30, %25 : vector<8x128xf32>
    %c0_13 = arith.constant 0 : index
    %c0_14 = arith.constant 0 : index
    %32 = vector.load %arg5[%c0_13, %c0_14] : memref<8x128xf32, #tpu.memory_space<vmem>>, vector<8x128xf32>
    tpu.vector_store %arg5[%c0_13, %c0_14], %31 {strides = array<i32>} : memref<8x128xf32, #tpu.memory_space<vmem>>, vector<8x128xf32>,
    %c0_15 = arith.constant 0 : index
    %c0_16 = arith.constant 0 : index
    %33 = vector.load %arg6[%c0_15, %c0_16] : memref<8x128xf32, #tpu.memory_space<vmem>>, vector<8x128xf32>
    tpu.vector_store %arg6[%c0_15, %c0_16], %29 {strides = array<i32>} : memref<8x128xf32, #tpu.memory_space<vmem>>, vector<8x128xf32>,
    return
  }
  func.func @transform_0(%arg0: i32) -> (i32, i32) {
    %c0_i32 = arith.constant 0 : i32
    %c0_i32_0 = arith.constant 0 : i32
    return %arg0, %c0_i32 : i32, i32
  }
  func.func @transform_1(%arg0: i32) -> (i32, i32) {
    %c0_i32 = arith.constant 0 : i32
    %c0_i32_0 = arith.constant 0 : i32
    return %arg0, %c0_i32 : i32, i32
  }
  func.func @transform_2(%arg0: i32) -> (i32, i32) {
    %c0_i32 = arith.constant 0 : i32
    %c0_i32_0 = arith.constant 0 : i32
    %c0_i32_1 = arith.constant 0 : i32
    return %c0_i32, %c0_i32_0 : i32, i32
  }
  func.func @transform_3(%arg0: i32) -> (i32, i32) {
    %c0_i32 = arith.constant 0 : i32
    %c0_i32_0 = arith.constant 0 : i32
    %c0_i32_1 = arith.constant 0 : i32
    return %c0_i32, %c0_i32_0 : i32, i32
  }
  func.func @transform_4(%arg0: i32) -> (i32, i32) {
    %c0_i32 = arith.constant 0 : i32
    %c0_i32_0 = arith.constant 0 : i32
    return %arg0, %c0_i32 : i32, i32
  }
  func.func @transform_5(%arg0: i32) -> (i32, i32) {
    %c0_i32 = arith.constant 0 : i32
    %c0_i32_0 = arith.constant 0 : i32
    return %arg0, %c0_i32 : i32, i32
  }
}

</mosaic_0001>

<bundles_post_ra>
// kernel: tpu_custom_call.1
= control target key start
LH: loop header
LB: loop body
LE: loop exit
PB: predicated region body
PF: predicated region fallthrough
CT: control target
= control target key end

     0   :  { %11 = vsyncpa [#allocation3], 0  ;;  %s536_s0 = inlined_call_operand.hbm [shape: bf16[8,64], index: 0, kind: input, shape index: {}]   ;;  %s537_s1 = inlined_call_operand.hbm [shape: f32[8,128], index: 1, kind: input, shape index: {}]   ;;  %s538_s2 = inlined_call_operand.hbm [shape: bf16[64,512], index: 2, kind: input, shape index: {}]   ;;  %s539_s3 = inlined_call_operand.vmem [shape: f32[1,512], index: 3, kind: input, shape index: {}]   ;;  %s540_s4 = inlined_call_operand.hbm [shape: f32[8,128], index: 4, kind: output, shape index: {0}]   ;;  %s541_s5 = inlined_call_operand.hbm [shape: f32[8,128], index: 5, kind: output, shape index: {1}]  }
   0x1   :  { %12 = vsyncpa [#allocation6], 0 }
   0x2   :  { %13 = vsyncpa [#allocation4], 0 }
   0x3   :  { %14 = vsyncpa [#allocation10], 0  ;;  %s480_s18 = smov [#allocation5]   ;;  %s481_s20 = smov [#allocation2]  }
   0x4   :  { %s31_s19 = sshll.u32 %s480_s18, 4  ;;  %s21_s21 = sshll.u32 %s481_s20, 4  ;;  %s32_s19 = int_to_ptr.vmem [resolvable:$true] %s31_s19  ;;  %s22_s21 = int_to_ptr.vmem [resolvable:$true] %s21_s21 }
   0x5   :  { %s380_s22 = scalar_lea.vmem %s32_s19, 128  ;;  %p385_p1 = scmp.lt.s32.totalorder %s32_s19, %s32_s19 }
   0x6   :  { %p381_p0 = scmp.ne.s32.totalorder %s32_s19, %s380_s22  ;;  %p386_p2 = scmp.lt.s32.totalorder %s380_s22, %s380_s22 }
   0x8   :  { %p387_p3 = por %p386_p2, %p385_p1 }
   0xa   :  { %p388_p4 = pnand %p387_p3, %p381_p0 }
   0xc   :  { %391 = shalt.err (!%p388_p4)
}
   0xd   :  { %34 = dma.hbm_to_vmem [thread:$0]  %s537_s1, 128, %s32_s19, [#allocation6]  }
   0xe   :  { %s400_s25 = scalar_lea.vmem %s22_s21, 64  ;;  %p405_p6 = scmp.lt.s32.totalorder %s22_s21, %s22_s21 }
   0xf   :  { %p401_p5 = scmp.ne.s32.totalorder %s22_s21, %s400_s25  ;;  %p406_p7 = scmp.lt.s32.totalorder %s400_s25, %s400_s25 }
  0x11   :  { %p407_p8 = por %p406_p7, %p405_p6 }
  0x13   :  { %p408_p9 = pnand %p407_p8, %p401_p5 }
  0x15   :  { %411 = shalt.err (!%p408_p9)
}
  0x16   :  { %24 = dma.hbm_to_vmem [thread:$0]  %s536_s0, 64, %s22_s21, [#allocation3]  }
  0x17   :  { %s482_s28 = smov [#allocation7]  }
  0x18   :  { %s40_s29 = sshll.u32 %s482_s28, 4  ;;  %s41_s29 = int_to_ptr.vmem [resolvable:$true] %s40_s29 }
  0x19   :  { %s420_s30 = scalar_lea.vmem %s41_s29, 2048  ;;  %p425_p11 = scmp.lt.s32.totalorder %s41_s29, %s41_s29 }
  0x1a   :  { %p421_p10 = scmp.ne.s32.totalorder %s41_s29, %s420_s30  ;;  %p426_p12 = scmp.lt.s32.totalorder %s420_s30, %s420_s30 }
  0x1c   :  { %p427_p13 = por %p426_p12, %p425_p11 }
  0x1e   :  { %p428_p0 = pnand %p427_p13, %p421_p10 }
  0x20   :  { %431 = shalt.err (!%p428_p0)
}
  0x21   :  { %s483_s1 = smov 256   ;;  %s484_s6 = smov 16  }
  0x22   :  { %46 = dma.hbm_to_vmem [thread:$0]  %s538_s2, 2048, %s41_s29, [#allocation6], %s483_s1, %s483_s1, %s484_s6  }
  0x23   :  { %472 = dma.done.wait [#allocation3], 64  }
  0x24   :  { %473 = vsyncadd [#allocation3], 4294967232 }
  0x25   :  { %474 = dma.done.wait [#allocation6], 2176  }
  0x26   :  { %475 = vsyncadd [#allocation6], 4294965120  ;;  %v485_v0 = vmov 0   ;;  %v338_v1 = vld [vmem:[#allocation7 + $0x64] ss:$16 sps:$4 sm:$0xff]   ;;  %vm178_vm0 = vcmask 523264   ;;  %v78_v18 = vlaneseq }
  0x27   :  { %214 = vmatprep.mubr.bf16.mxu0 %v485_v0  ;;  %255 = vmatprep.mubr.bf16.mxu1 %v485_v0  ;;  %v340_v2 = vld [vmem:[#allocation7 + $0x6c] ss:$16 sps:$4 sm:$0xff]   ;;  %v342_v3 = vld [vmem:[#allocation7 + $0x60] ss:$16 sps:$4 sm:$0xff]   ;;  %v343_v4 = vld [vmem:[#allocation7 + $0x68] ss:$16 sps:$4 sm:$0xff]  }
  0x28   :  { %190 = vmatprep.subr.bf16.mxu0 %v338_v1  ;;  %231 = vmatprep.subr.bf16.mxu1 %v340_v2  ;;  %v344_v5 = vld [vmem:[#allocation7 + $0x44] ss:$16 sps:$4 sm:$0xff]   ;;  %v346_v6 = vld [vmem:[#allocation7 + $0x4c] ss:$16 sps:$4 sm:$0xff]   ;;  %v348_v7 = vld [vmem:[#allocation7 + $0x40] ss:$16 sps:$4 sm:$0xff]  }
  0x29   :  { %191 = vmatpush1.bf16.msra.mxu0 %v342_v3  ;;  %232 = vmatpush1.bf16.msra.mxu1 %v343_v4  ;;  %v349_v8 = vld [vmem:[#allocation7 + $0x48] ss:$16 sps:$4 sm:$0xff]   ;;  %v350_v9 = vld [vmem:[#allocation7 + $0x24] ss:$16 sps:$4 sm:$0xff]   ;;  %v352_v10 = vld [vmem:[#allocation7 + $0x2c] ss:$16 sps:$4 sm:$0xff]  }
  0x2a   :  { %192 = vmatprep.subr.bf16.mxu0 %v344_v5  ;;  %233 = vmatprep.subr.bf16.mxu1 %v346_v6  ;;  %v354_v11 = vld [vmem:[#allocation7 + $0x20] ss:$16 sps:$4 sm:$0xff]   ;;  %v355_v12 = vld [vmem:[#allocation7 + $0x28] ss:$16 sps:$4 sm:$0xff]   ;;  %v356_v13 = vld [vmem:[#allocation7 + $0x4] ss:$16 sps:$4 sm:$0xff]  }
  0x2b   :  { %v358_v14 = vld [vmem:[#allocation7 + $0xc] ss:$16 sps:$4 sm:$0xff]   ;;  %v360_v15 = vld [vmem:[#allocation7] ss:$16 sps:$4 sm:$0xff]   ;;  %v361_v16 = vld [vmem:[#allocation7 + $0x8] ss:$16 sps:$4 sm:$0xff]  }
  0x2c   :  { %v59_v17 = vld [vmem:[#allocation2] sm:$0xf]  ;;  %v79_v19 = vshrl.u32 %v78_v18, 7  ;;  %v274_v44 = vld [vmem:[#allocation5] sm:$0xff] }
  0x2d   :  { %193 = vmatpush1.bf16.msra.mxu0 %v348_v7  ;;  %234 = vmatpush1.bf16.msra.mxu1 %v349_v8  ;;  %v76_v22 = vld [vmem:[%s539_s3] sm:$0xf]  ;;  %s486_s3 = smov [#allocation9]  }
  0x2e   :  { %194 = vmatprep.subr.bf16.mxu0 %v350_v9  ;;  %235 = vmatprep.subr.bf16.mxu1 %v352_v10  ;;  %v88_v20 = vsub.s32 2, %v79_v19  ;;  %v84_v21 = vsub.s32 1, %v79_v19  ;;  %v80_v23 = vsub.s32 0, %v79_v19  ;;  %v92_v38 = vsub.s32 3, %v79_v19  ;;  %s298_s9 = sshll.u32 %s486_s3, 4  ;;  %s299_s9 = int_to_ptr.vmem [resolvable:$true] %s298_s9 }
  0x2f   :  { %s432_s10 = scalar_lea.vmem %s299_s9, 128  ;;  %p437_p2 = scmp.lt.s32.totalorder %s299_s9, %s299_s9 }
  0x30   :  { %v89_v24 = vrot.slane %v76_v22, %v88_v20  ;;  %v85_v25 = vrot.slane %v76_v22, %v84_v21  ;;  %v81_v28 = vrot.slane %v76_v22, %v80_v23  ;;  %v93_v39 = vrot.slane %v76_v22, %v92_v38  ;;  %p433_p1 = scmp.ne.s32.totalorder %s299_s9, %s432_s10  ;;  %p438_p3 = scmp.lt.s32.totalorder %s432_s10, %s432_s10 }
  0x31   :  { %195 = vmatpush1.bf16.msra.mxu0 %v354_v11  ;;  %236 = vmatpush1.bf16.msra.mxu1 %v355_v12 }
  0x32   :  { %196 = vmatprep.subr.bf16.mxu0 %v356_v13  ;;  %237 = vmatprep.subr.bf16.mxu1 %v358_v14  ;;  %p439_p4 = por %p438_p3, %p437_p2 }
  0x34   :  { %p440_p5 = pnand %p439_p4, %p433_p1 }
  0x35   :  { %197 = vmatpush1.bf16.msra.mxu0 %v360_v15  ;;  %238 = vmatpush1.bf16.msra.mxu1 %v361_v16 }
  0x38   :  { %328 = vmatmul.mubr.msk.bf16.vlgmr.msra.gmra.mxu0 %vm178_vm0, %v59_v17  ;;  %329 = vmatmul.mubr.msk.bf16.vlgmr.msra.gmra.mxu1 %vm178_vm0, %v59_v17 }
  0xf8   :  { %v216_v26 = vpop.f32.mrf.mxu0  ;;  %v257_v27 = vpop.f32.mrf.mxu1 }
  0xf9   :  { %v258_v29 = vadd.f32 %v257_v27, %v89_v24  ;;  %v217_v35 = vadd.f32 %v216_v26, %v81_v28 }
  0xfa   :  { %v218_v30 = vpop.f32.mrf.mxu0  ;;  %v259_v31 = vpop.f32.mrf.mxu1 }
  0xfb   :  { %v219_v32 = vadd.f32 %v218_v30, %v85_v25  ;;  %362 = vtanh.f32 %v258_v29  ;;  %v260_v40 = vadd.f32 %v259_v31, %v93_v39 }
  0xfc   :  { %v220_v33 = vpop.f32.mrf.mxu0  ;;  %v261_v34 = vpop.f32.mrf.mxu1 }
  0xfd   :  { %364 = vtanh.f32 %v219_v32 }
  0xfe   :  { %v221_v36 = vpop.f32.mrf.mxu0  ;;  %v262_v37 = vpop.f32.mrf.mxu1  ;;  %366 = vtanh.f32 %v217_v35 }
  0xff   :  { %368 = vtanh.f32 %v260_v40 }
 0x108   :  { %v363_v41 = vpop.eup %362 }
 0x109   :  { %v269_v43 = vmul.f32 0.5, %v363_v41 }
 0x10a   :  { %v365_v42 = vpop.eup %364 }
 0x10b   :  { %v266_v45 = vmul.f32 0.5, %v365_v42  ;;  %v270_v46 = vadd.f32 0.5, %v269_v43  ;;  %v367_v48 = vpop.eup %366 }
 0x10d   :  { %v267_v47 = vadd.f32 0.5, %v266_v45  ;;  %v275_v49 = vmul.f32 %v274_v44, %v270_v46 }
 0x10f   :  { %v276_v50 = vmul.f32 %v367_v48, %v267_v47 }
 0x111   :  { %v277_v51 = vadd.f32 %v276_v50, %v275_v49 }
 0x113   :  { %370 = vtanh.f32 %v277_v51  ;;  %281 = vst [vmem:[#allocation9] sm:$0xff] %v277_v51 }
 0x114   :  { %443 = shalt.err (!%p440_p5)
}
 0x115   :  { %301 = dma.vmem_to_hbm [thread:$0]  %s299_s9, 128, %s541_s5, [#allocation10]   ;;  %v369_v52 = vpop.eup %368 }
 0x116   :  { %v272_v53 = vmul.f32 0.5, %v369_v52  ;;  %s487_s13 = smov [#allocation8]  }
 0x117   :  { %s288_s14 = sshll.u32 %s487_s13, 4  ;;  %s289_s14 = int_to_ptr.vmem [resolvable:$true] %s288_s14 }
 0x118   :  { %v273_v54 = vadd.f32 0.5, %v272_v53  ;;  %s452_s15 = scalar_lea.vmem %s289_s14, 128  ;;  %p457_p7 = scmp.lt.s32.totalorder %s289_s14, %s289_s14 }
 0x119   :  { %p453_p6 = scmp.ne.s32.totalorder %s289_s14, %s452_s15  ;;  %p458_p8 = scmp.lt.s32.totalorder %s452_s15, %s452_s15 }
 0x11b   :  { %p459_p9 = por %p458_p8, %p457_p7 }
 0x11d   :  { %p460_p10 = pnand %p459_p9, %p453_p6 }
 0x120   :  { %v371_v55 = vpop.eup %370 }
 0x121   :  { %v279_v56 = vmul.f32 %v371_v55, %v273_v54 }
 0x123   :  { %280 = vst [vmem:[#allocation8] sm:$0xff] %v279_v56 }
 0x124   :  { %463 = shalt.err (!%p460_p10)
}
 0x125   :  { %291 = dma.vmem_to_hbm [thread:$0]  %s289_s14, 128, %s540_s4, [#allocation4]  }
 0x126   :  { %476 = dma.done.wait [#allocation4], 128  }
 0x127   :  { %477 = vsyncadd [#allocation4], 4294967168 }
 0x128   :  { %478 = dma.done.wait [#allocation10], 128  }
 0x129   :  { %479 = vsyncadd [#allocation10], 4294967168 }
 0x12a   :  { %308 = vsyncpa [#allocation3], 1 }
 0x12b   :  { %309 = vsyncpa [#allocation6], 1 }
 0x12c   :  { %310 = vsyncpa [#allocation4], 1 }
 0x12d   :  { %311 = vsyncpa [#allocation10], 1 }

</bundles_post_ra>
